<compile_context>
chip_gen: v7x
topology: tpu7x:2x2x1
jax: 0.10.0
libtpu: 0.0.40
codegen_flags: <defaults>
</compile_context>

<pallas_src>
import functools

import jax
import jax.numpy as jnp
import numpy as np
from jax.experimental import pallas as pl
from jax.experimental.pallas import tpu as pltpu


def _spline_fwd_kernel(x_ref, tyd_ref, o_ref, *, K):
    # x_ref:   (1, bn)      input values (batch on lanes)
    # tyd_ref: (3K, bn)     rows [0:K]=t, [K:2K]=y, [2K:3K]=d
    # o_ref:   (1, bn)      float32 output
    x = x_ref[...].astype(jnp.float32)          # (1, bn)
    tyd = tyd_ref[...].astype(jnp.float32)      # (3K, bn) (bf16 storage upcast here)
    t = tyd[0:K, :]                             # (K, bn)
    y = tyd[K:2 * K, :]
    d = tyd[2 * K:3 * K, :]
    bn = x.shape[-1]

    # i = number of knots strictly below x (per batch column)
    i = jnp.sum((x > t).astype(jnp.int32), axis=0, keepdims=True)   # (1, bn)
    eq0 = i == 0
    eq1 = i == K

    # clamped bracketing knot indices; after clamping k1 == k0 + 1 always
    k0 = jnp.where(eq0, 0, jnp.where(eq1, K - 2, i - 1))             # (1, bn)
    k1 = k0 + 1

    # shared one-hot masks on the knot (sublane) axis; where-select gather
    knot = jax.lax.broadcasted_iota(jnp.int32, (K, bn), 0)           # (K, bn)
    sel0 = knot == k0
    sel1 = knot == k1

    def gather(a, sel):
        # torch.gather equivalent: masked 8-sublane reduction (cheap XLU work)
        return jnp.sum(jnp.where(sel, a, 0.0), axis=0, keepdims=True)  # (1, bn)

    t0 = gather(t, sel0); t1 = gather(t, sel1)
    y0 = gather(y, sel0); y1 = gather(y, sel1)
    d0 = gather(d, sel0); d1 = gather(d, sel1)

    # interior rational spline segment (one shared reciprocal for s and e)
    delta_t = t1 - t0
    delta_y = y1 - y0
    inv_dt = 1.0 / delta_t
    s = delta_y * inv_dt
    e = (x - t0) * inv_dt
    ome = 1.0 - e
    n0 = delta_y * (s * e * e + d0 * e * ome)
    n1 = s + (d1 + d0 - 2.0 * s) * e * ome
    p_mid = y0 + n0 / n1

    # linear extrapolation below first / above last knot
    p_lo = d0 * x + (y0 - d0 * t0)
    p_hi = d1 * x + (y1 - d1 * t1)

    p = jnp.where(eq0, p_lo, jnp.where(eq1, p_hi, p_mid))
    o_ref[...] = p.astype(o_ref.dtype)


def pack_spline_params(t, y, d):
    """One-time packing (SplineBlock.set time): [N,K] params -> stacked [3K,N]."""
    return jnp.concatenate([t.T, y.T, d.T], axis=0)


def spline_forward(x, tyd_T, K, *, block_n=2048):
    """x: (N,1); tyd_T: (3K,N) packed params (see pack_spline_params). Returns (N,1) f32."""
    threeK, N = tyd_T.shape
    assert threeK == 3 * K and K >= 2
    assert x.shape == (N, 1)
    assert block_n % 128 == 0

    # (N,1) -> (1,N) is a free row-major reshape (batch onto the lane axis).
    x_t = jnp.reshape(x, (1, N))

    if N <= block_n:
        bn, Np = N, N                      # single tile; full-dim block is legal
    else:
        bn = block_n
        Np = ((N + bn - 1) // bn) * bn     # pad lanes; padded columns are discarded
    if Np != N:
        x_t = jnp.pad(x_t, ((0, 0), (0, Np - N)))
        tyd_T = jnp.pad(tyd_T, ((0, 0), (0, Np - N)))

    out = pl.pallas_call(
        functools.partial(_spline_fwd_kernel, K=K),
        out_shape=jax.ShapeDtypeStruct((1, Np), jnp.float32),
        grid_spec=pltpu.PrefetchScalarGridSpec(
            num_scalar_prefetch=0,
            grid=(Np // bn,),
            in_specs=[
                pl.BlockSpec((1, bn), lambda i: (0, i)),        # x
                pl.BlockSpec((3 * K, bn), lambda i: (0, i)),    # stacked t/y/d
            ],
            out_specs=pl.BlockSpec((1, bn), lambda i: (0, i)),  # lane-dense output
        ),
        compiler_params=pltpu.CompilerParams(
            dimension_semantics=("parallel",)),
    )(x_t, tyd_T)

    return jnp.reshape(out[:, :N], (N, 1))


def spline_forward_ref(x, t, y, d):
    """NumPy (float64) reference mirroring the PyTorch forward() exactly."""
    x = np.asarray(x, np.float64); t = np.asarray(t, np.float64)
    y = np.asarray(y, np.float64); d = np.asarray(d, np.float64)
    N, K = t.shape
    xs = x[:, 0]
    i = (x > t).sum(axis=-1)
    eq0 = i == 0
    eq1 = i == K
    k0 = np.where(eq0, 0, np.where(eq1, K - 2, i - 1))
    k1 = np.where(eq0, 1, np.where(eq1, K - 1, i))
    rows = np.arange(N)
    t0 = t[rows, k0]; t1 = t[rows, k1]
    y0 = y[rows, k0]; y1 = y[rows, k1]
    d0 = d[rows, k0]; d1 = d[rows, k1]
    dt = t1 - t0; dy = y1 - y0; s = dy / dt
    e = (xs - t0) / dt
    n0 = dy * (s * e * e + d0 * e * (1.0 - e))
    n1 = s + (d1 + d0 - 2.0 * s) * e * (1.0 - e)
    p = np.where(eq0, d0 * xs + (y0 - d0 * t0),
                 np.where(eq1, d1 * xs + (y1 - d1 * t1), y0 + n0 / n1))
    return p[:, None]


def _make_params(key, N, K):
    k1_, k2_, k3_, k4_ = jax.random.split(key, 4)
    t_inc = jax.nn.softplus(jax.random.normal(k1_, (N, K), jnp.float32)) + 0.1
    t = jnp.cumsum(t_inc, axis=-1) - 2.0                      # strictly increasing knots
    y_inc = jax.nn.softplus(jax.random.normal(k2_, (N, K), jnp.float32)) + 0.1
    y = jnp.cumsum(y_inc, axis=-1) - 1.0                      # increasing values
    d = jax.nn.softplus(jax.random.normal(k3_, (N, K), jnp.float32)) + 0.1  # slopes > 0
    x = 3.0 * jax.random.normal(k4_, (N, 1), jnp.float32)     # hits interior + both tails
    return x, t, y, d


if __name__ == "__main__":
    key = jax.random.PRNGKey(0)
    K = 8

    # ---- main check: f32 storage, lane-dense tiles, 8 grid steps ----
    N = 4096
    x, t, y, d = _make_params(key, N, K)
    tyd_T = pack_spline_params(t, y, d)          # one-time "set()"-time packing
    out = jax.block_until_ready(spline_forward(x, tyd_T, K, block_n=512))
    ref = spline_forward_ref(x, t, y, d)
    np.testing.assert_allclose(np.asarray(out), ref, rtol=1e-5, atol=1e-5)

    # ---- bf16 storage / f32 compute (halves HBM traffic on v6e/v7x) ----
    xb = x.astype(jnp.bfloat16)
    tb, yb, db = (a.astype(jnp.bfloat16) for a in (t, y, d))
    out_b = jax.block_until_ready(
        spline_forward(xb, pack_spline_params(tb, yb, db), K, block_n=512))
    ref_b = spline_forward_ref(xb.astype(jnp.float32), tb.astype(jnp.float32),
                               yb.astype(jnp.float32), db.astype(jnp.float32))
    np.testing.assert_allclose(np.asarray(out_b), ref_b, rtol=1e-4, atol=1e-4)

    # ---- ragged N (exercises lane padding path) ----
    N2 = 700
    x2, t2, y2, d2 = _make_params(jax.random.PRNGKey(1), N2, K)
    out2 = jax.block_until_ready(
        spline_forward(x2, pack_spline_params(t2, y2, d2), K, block_n=512))
    ref2 = spline_forward_ref(x2, t2, y2, d2)
    np.testing.assert_allclose(np.asarray(out2), ref2, rtol=1e-5, atol=1e-5)

    print("KERNEL_OK")
</pallas_src>

<mosaic_0001>
module attributes {stable_mosaic.version = 11 : i64} {
  func.func @_spline_fwd_kernel(%arg0: i32, %arg1: memref<1x512xf32, #tpu.memory_space<vmem>>, %arg2: memref<24x512xf32, #tpu.memory_space<vmem>>, %arg3: memref<1x512xf32, #tpu.memory_space<vmem>>) attributes {dimension_semantics = [#tpu.dimension_semantics<parallel>], iteration_bounds = array<i64: 8>, scalar_prefetch = 0 : i64, scratch_operands = 0 : i64, tpu.core_type = #tpu.core_type<tc>, window_params = [{transform_indices = @transform_0, window_bounds = array<i64: 1, 512>}, {transform_indices = @transform_1, window_bounds = array<i64: 24, 512>}, {transform_indices = @transform_2, window_bounds = array<i64: 1, 512>}]} {
    %c0 = arith.constant 0 : index
    %c0_0 = arith.constant 0 : index
    %0 = vector.load %arg1[%c0, %c0_0] : memref<1x512xf32, #tpu.memory_space<vmem>>, vector<1x512xf32>
    %c0_1 = arith.constant 0 : index
    %c0_2 = arith.constant 0 : index
    %1 = vector.load %arg2[%c0_1, %c0_2] : memref<24x512xf32, #tpu.memory_space<vmem>>, vector<24x512xf32>
    %2 = vector.extract_strided_slice %1 {offsets = [0, 0], sizes = [8, 512], strides = [1, 1]} : vector<24x512xf32> to vector<8x512xf32>
    %3 = vector.extract_strided_slice %1 {offsets = [8, 0], sizes = [8, 512], strides = [1, 1]} : vector<24x512xf32> to vector<8x512xf32>
    %4 = vector.extract_strided_slice %1 {offsets = [16, 0], sizes = [8, 512], strides = [1, 1]} : vector<24x512xf32> to vector<8x512xf32>
    %5 = vector.broadcast %0 : vector<1x512xf32> to vector<8x512xf32>
    %6 = arith.cmpf ogt, %5, %2 : vector<8x512xf32>
    %7 = arith.extui %6 : vector<8x512xi1> to vector<8x512xi32>
    %cst = arith.constant dense<0> : vector<512xi32>
    %8 = vector.multi_reduction <add>, %7, %cst [0] : vector<8x512xi32> to vector<512xi32>
    %9 = vector.shape_cast %8 : vector<512xi32> to vector<1x512xi32>
    %c0_i32 = arith.constant 0 : i32
    %10 = vector.broadcast %c0_i32 : i32 to vector<1x512xi32>
    %11 = arith.cmpi eq, %9, %10 : vector<1x512xi32>
    %c8_i32 = arith.constant 8 : i32
    %12 = vector.broadcast %c8_i32 : i32 to vector<1x512xi32>
    %13 = arith.cmpi eq, %9, %12 : vector<1x512xi32>
    %c1_i32 = arith.constant 1 : i32
    %14 = vector.broadcast %c1_i32 : i32 to vector<1x512xi32>
    %15 = arith.subi %9, %14 : vector<1x512xi32>
    %c6_i32 = arith.constant 6 : i32
    %16 = vector.broadcast %c6_i32 : i32 to vector<1x512xi32>
    %17 = arith.select %13, %16, %15 : vector<1x512xi1>, vector<1x512xi32>
    %c0_i32_3 = arith.constant 0 : i32
    %18 = vector.broadcast %c0_i32_3 : i32 to vector<1x512xi32>
    %19 = arith.select %11, %18, %17 : vector<1x512xi1>, vector<1x512xi32>
    %c1_i32_4 = arith.constant 1 : i32
    %20 = vector.broadcast %c1_i32_4 : i32 to vector<1x512xi32>
    %21 = arith.addi %19, %20 : vector<1x512xi32>
    %22 = tpu.iota {dimensions = array<i32: 0>} : vector<8x512xi32>
    %23 = vector.broadcast %19 : vector<1x512xi32> to vector<8x512xi32>
    %24 = arith.cmpi eq, %22, %23 : vector<8x512xi32>
    %25 = vector.broadcast %21 : vector<1x512xi32> to vector<8x512xi32>
    %26 = arith.cmpi eq, %22, %25 : vector<8x512xi32>
    %cst_5 = arith.constant 0.000000e+00 : f32
    %27 = vector.broadcast %cst_5 : f32 to vector<8x512xf32>
    %28 = arith.select %24, %2, %27 : vector<8x512xi1>, vector<8x512xf32>
    %cst_6 = arith.constant dense<0.000000e+00> : vector<512xf32>
    %29 = vector.multi_reduction <add>, %28, %cst_6 [0] : vector<8x512xf32> to vector<512xf32>
    %30 = vector.shape_cast %29 : vector<512xf32> to vector<1x512xf32>
    %cst_7 = arith.constant 0.000000e+00 : f32
    %31 = vector.broadcast %cst_7 : f32 to vector<8x512xf32>
    %32 = arith.select %26, %2, %31 : vector<8x512xi1>, vector<8x512xf32>
    %cst_8 = arith.constant dense<0.000000e+00> : vector<512xf32>
    %33 = vector.multi_reduction <add>, %32, %cst_8 [0] : vector<8x512xf32> to vector<512xf32>
    %34 = vector.shape_cast %33 : vector<512xf32> to vector<1x512xf32>
    %cst_9 = arith.constant 0.000000e+00 : f32
    %35 = vector.broadcast %cst_9 : f32 to vector<8x512xf32>
    %36 = arith.select %24, %3, %35 : vector<8x512xi1>, vector<8x512xf32>
    %cst_10 = arith.constant dense<0.000000e+00> : vector<512xf32>
    %37 = vector.multi_reduction <add>, %36, %cst_10 [0] : vector<8x512xf32> to vector<512xf32>
    %38 = vector.shape_cast %37 : vector<512xf32> to vector<1x512xf32>
    %cst_11 = arith.constant 0.000000e+00 : f32
    %39 = vector.broadcast %cst_11 : f32 to vector<8x512xf32>
    %40 = arith.select %26, %3, %39 : vector<8x512xi1>, vector<8x512xf32>
    %cst_12 = arith.constant dense<0.000000e+00> : vector<512xf32>
    %41 = vector.multi_reduction <add>, %40, %cst_12 [0] : vector<8x512xf32> to vector<512xf32>
    %42 = vector.shape_cast %41 : vector<512xf32> to vector<1x512xf32>
    %cst_13 = arith.constant 0.000000e+00 : f32
    %43 = vector.broadcast %cst_13 : f32 to vector<8x512xf32>
    %44 = arith.select %24, %4, %43 : vector<8x512xi1>, vector<8x512xf32>
    %cst_14 = arith.constant dense<0.000000e+00> : vector<512xf32>
    %45 = vector.multi_reduction <add>, %44, %cst_14 [0] : vector<8x512xf32> to vector<512xf32>
    %46 = vector.shape_cast %45 : vector<512xf32> to vector<1x512xf32>
    %cst_15 = arith.constant 0.000000e+00 : f32
    %47 = vector.broadcast %cst_15 : f32 to vector<8x512xf32>
    %48 = arith.select %26, %4, %47 : vector<8x512xi1>, vector<8x512xf32>
    %cst_16 = arith.constant dense<0.000000e+00> : vector<512xf32>
    %49 = vector.multi_reduction <add>, %48, %cst_16 [0] : vector<8x512xf32> to vector<512xf32>
    %50 = vector.shape_cast %49 : vector<512xf32> to vector<1x512xf32>
    %51 = arith.subf %34, %30 : vector<1x512xf32>
    %52 = arith.subf %42, %38 : vector<1x512xf32>
    %cst_17 = arith.constant 1.000000e+00 : f32
    %53 = vector.broadcast %cst_17 : f32 to vector<1x512xf32>
    %54 = arith.divf %53, %51 : vector<1x512xf32>
    %55 = arith.mulf %52, %54 : vector<1x512xf32>
    %56 = arith.subf %0, %30 : vector<1x512xf32>
    %57 = arith.mulf %56, %54 : vector<1x512xf32>
    %cst_18 = arith.constant 1.000000e+00 : f32
    %58 = vector.broadcast %cst_18 : f32 to vector<1x512xf32>
    %59 = arith.subf %58, %57 : vector<1x512xf32>
    %60 = arith.mulf %55, %57 : vector<1x512xf32>
    %61 = arith.mulf %60, %57 : vector<1x512xf32>
    %62 = arith.mulf %46, %57 : vector<1x512xf32>
    %63 = arith.mulf %62, %59 : vector<1x512xf32>
    %64 = arith.addf %61, %63 : vector<1x512xf32>
    %65 = arith.mulf %52, %64 : vector<1x512xf32>
    %66 = arith.addf %50, %46 : vector<1x512xf32>
    %cst_19 = arith.constant 2.000000e+00 : f32
    %67 = vector.broadcast %cst_19 : f32 to vector<1x512xf32>
    %68 = arith.mulf %67, %55 : vector<1x512xf32>
    %69 = arith.subf %66, %68 : vector<1x512xf32>
    %70 = arith.mulf %69, %57 : vector<1x512xf32>
    %71 = arith.mulf %70, %59 : vector<1x512xf32>
    %72 = arith.addf %55, %71 : vector<1x512xf32>
    %73 = arith.divf %65, %72 : vector<1x512xf32>
    %74 = arith.addf %38, %73 : vector<1x512xf32>
    %75 = arith.mulf %46, %0 : vector<1x512xf32>
    %76 = arith.mulf %46, %30 : vector<1x512xf32>
    %77 = arith.subf %38, %76 : vector<1x512xf32>
    %78 = arith.addf %75, %77 : vector<1x512xf32>
    %79 = arith.mulf %50, %0 : vector<1x512xf32>
    %80 = arith.mulf %50, %34 : vector<1x512xf32>
    %81 = arith.subf %42, %80 : vector<1x512xf32>
    %82 = arith.addf %79, %81 : vector<1x512xf32>
    %83 = arith.select %13, %82, %74 : vector<1x512xi1>, vector<1x512xf32>
    %84 = arith.select %11, %78, %83 : vector<1x512xi1>, vector<1x512xf32>
    %c0_20 = arith.constant 0 : index
    %c0_21 = arith.constant 0 : index
    %85 = vector.load %arg3[%c0_20, %c0_21] : memref<1x512xf32, #tpu.memory_space<vmem>>, vector<1x512xf32>
    tpu.vector_store %arg3[%c0_20, %c0_21], %84 {strides = array<i32>} : memref<1x512xf32, #tpu.memory_space<vmem>>, vector<1x512xf32>,
    return
  }
  func.func @transform_0(%arg0: i32) -> (i32, i32) {
    %c0_i32 = arith.constant 0 : i32
    %c0_i32_0 = arith.constant 0 : i32
    return %c0_i32, %arg0 : i32, i32
  }
  func.func @transform_1(%arg0: i32) -> (i32, i32) {
    %c0_i32 = arith.constant 0 : i32
    %c0_i32_0 = arith.constant 0 : i32
    return %c0_i32, %arg0 : i32, i32
  }
  func.func @transform_2(%arg0: i32) -> (i32, i32) {
    %c0_i32 = arith.constant 0 : i32
    %c0_i32_0 = arith.constant 0 : i32
    return %c0_i32, %arg0 : i32, i32
  }
}

</mosaic_0001>

<bundles_post_ra>
// kernel: tpu_custom_call.1
= control target key start
LH: loop header
LB: loop body
LE: loop exit
PB: predicated region body
PF: predicated region fallthrough
CT: control target
= control target key end

     0   :  { %7 = vsyncpa [#allocation3], 0  ;;  %s1705_s0 = inlined_call_operand.hbm [shape: f32[1,4096], index: 0, kind: input, shape index: {}]   ;;  %s1706_s1 = inlined_call_operand.hbm [shape: f32[24,4096], index: 1, kind: input, shape index: {}]   ;;  %s1707_s2 = inlined_call_operand.hbm [shape: f32[1,4096], index: 2, kind: output, shape index: {}]  }
   0x1   :  { %9 = vsyncpa [#allocation3 + $0x1], 0 }
   0x2   :  { %10 = vsyncpa [#allocation6], 0 }
   0x3   :  { %12 = vsyncpa [#allocation6 + $0x1], 0 }
   0x4   :  { %13 = vsyncpa [#allocation4], 0 }
   0x5   :  { %15 = vsyncpa [#allocation4 + $0x1], 0  ;;  %s1088_s9 = smov 0   ;;  %s1090_s10 = smov 0  }
   0x6   :  { %s1092_s11 = smov 0   ;;  %s1094_s12 = smov 0  }
   0x7 LB: > { %s1109_s13 = sadd.s32 4294967295, %s1063_s12   ;;  %s836_s14 = sadd.s32 4294967294, %s1063_s12   ;;  %s1063_s12 = sphi %s1094_s12, %s1765_s12   ;;  %s1059_s11 = sphi %s1092_s11, %s1764_s11   ;;  %s1055_s10 = sphi %s1090_s10, %s1763_s10   ;;  %s1051_s9 = sphi %s1088_s9, %s1762_s9  }
   0x8   : > { %s1113_s15 = sadd.s32 1, %s1063_s12   ;;  %s28_s16 = sadd.s32 1, %s1059_s11 }
   0x9   : > { %s25_s17 = ssub.s32 %s1063_s12, %s1113_s15  ;;  %p35_p0 = scmp.ne.s32.totalorder %s1059_s11, %s1055_s10 }
   0xa   : > { %p26_p1 = scmp.eq.s32.totalorder %s25_s17, 0  ;;  %p36_p2 = scmp.eq.s32.totalorder %s1063_s12, 0 }
   0xb   : > { %p41_p3 = scmp.ne.s32.totalorder %s1055_s10, %s1051_s9  ;;  %p42_p4 = scmp.eq.s32.totalorder %s1109_s13, 0 }
   0xc   : > { %s1125_s18 = scalar_select %p26_p1, %s1059_s11, %s28_s16  }
   0xd   : > { %p1127_p5 = por %p36_p2, %p35_p0  ;;  %p1131_p6 = por %p42_p4, %p41_p3 }
   0xe   : > { %p91_p7 = scmp.eq.s32.totalorder %s1109_s13, 7  ;;  %p97_p8 = scmp.eq.s32.totalorder %s836_s14, 7 }
   0xf   : > { %s1731_s20 = scalar_select %p1131_p6, 1, 0 }
  0x10   : > { %p878_p9 = scmp.lt.s32.totalorder %s1063_s12, 8  ;;  %p1137_p10 = por %p91_p7, %p35_p0 }
  0x11   : > { %p1141_p11 = por %p97_p8, %p41_p3  ;;  %s1146_s23 = sand.u32 1, %s1059_s11  }
  0x12   : > { %s1732_s21 = scalar_select %p1137_p10, 1, 0 }
  0x13   : > { %s1733_s22 = scalar_select %p1141_p11, 1, 0 }
  0x14   : > { %s856_s24 = sshll.u32 %s1063_s12, 6  ;;  %s839_s25 = sshll.u32 %s1146_s23, 2 }
  0x15   : > { %s1153_s28 = scalar_lea.hbm %s1705_s0, %s856_s24  ;;  %s121_s29 = scalar_lea.vmem [#allocation2], %s839_s25 }
  0x16   : > { %s129_s30 = sshll.u32 %s121_s29, 4  ;;  %p1157_p12 = pnand %p878_p9, %p1127_p5  ;;  %s1161_s30 = int_to_ptr.vmem [resolvable:$true] %s129_s30 }
  0x17   : > { %s859_s4 = smul.u32 96, %s1146_s23  ;;  %s118_s5 = scalar_lea.sflag [#allocation3], %s1146_s23 }
  0x18   : > { %s933_s6 = scalar_lea.hbm %s1153_s28, 64  ;;  %p935_p0 = pneg %p1157_p12 }
  0x19   : > { %p934_p13 = scmp.ne.s32.totalorder %s1153_s28, %s933_s6  ;;  %s938_s14 = scalar_lea.hbm %s1705_s0, 512 }
  0x1a   : > { %p939_p3 = scmp.lt.u32.totalorder %s1153_s28, %s1705_s0  ;;  %p940_p4 = scmp.lt.u32.totalorder %s938_s14, %s933_s6 }
  0x1b   : > { %p936_p1 = pnand %p935_p0, %p934_p13  ;;  %p942_p7 = scmp.lt.u32.totalorder %s933_s6, %s1153_s28 }
  0x1c   : > { %p941_p5 = por %p940_p4, %p939_p3 }
  0x1d   : > { %p937_p2 = pneg %p936_p1 }
  0x1e   : > { %p943_p8 = por %p942_p7, %p941_p5 }
  0x20   : > { %p944_p9 = pnand %p943_p8, %p937_p2 }
  0x22   : > { %947 = shalt.err (!%p944_p9)
}
  0x23   : > { %s948_s19 = scalar_lea.vmem %s1161_s30, 64  ;;  %s1065_s24 = smov [#allocation2]  }
  0x24   : > { %p949_p13 = scmp.ne.s32.totalorder %s1161_s30, %s948_s19  ;;  %s953_s25 = sshll.u32 %s1065_s24, 4  ;;  %s954_s25 = int_to_ptr.vmem [resolvable:$false] %s953_s25 }
  0x25   : > { %s955_s26 = scalar_lea.vmem %s954_s25, 128  ;;  %p956_p10 = scmp.lt.s32.totalorder %s1161_s30, %s954_s25 }
  0x26   : > { %p951_p1 = pnand %p949_p13, %p935_p0  ;;  %p957_p3 = scmp.lt.s32.totalorder %s955_s26, %s948_s19 }
  0x28   : > { %p952_p11 = pneg %p951_p1  ;;  %p958_p4 = por %p957_p3, %p956_p10 }
  0x2a   : > { %p959_p5 = pnand %p958_p4, %p952_p11 }
  0x2c   : > { %962 = shalt.err (!%p959_p5)
}
  0x2d   : > { %870 = dma.hbm_to_vmem [thread:$0]  (!%p1157_p12), %s1153_s28, 64, %s1161_s30, %s118_s5  }
  0x2e   : > { %p844_p2 = scmp.ge.s32.totalorder %s1063_s12, 1  ;;  %p155_p7 = scmp.lt.s32.totalorder %s1063_s12, 9 }
  0x2f   : > { %s857_s27 = sshll.u32 %s1063_s12, 9  ;;  %s140_s8 = scalar_lea.vmem [#allocation5], %s859_s4 }
  0x30   : > { %s1196_s7 = scalar_lea.hbm %s1706_s1, %s857_s27  ;;  %s147_s14 = sshll.u32 %s140_s8, 4  ;;  %s1204_s14 = int_to_ptr.vmem [resolvable:$true] %s147_s14 }
  0x31   : > { %p1200_p10 = pnand %p844_p2, %p155_p7  ;;  %s137_s28 = scalar_lea.sflag [#allocation6], %s1146_s23 }
  0x32   : > { %s963_s30 = scalar_lea.hbm %s1196_s7, 1536  ;;  %s968_s19 = scalar_lea.hbm %s1706_s1, 12288 }
  0x33   : > { %p964_p11 = scmp.ne.s32.totalorder %s1196_s7, %s963_s30  ;;  %p969_p13 = scmp.lt.u32.totalorder %s1196_s7, %s1706_s1 }
  0x34   : > { %p970_p1 = scmp.lt.u32.totalorder %s968_s19, %s963_s30  ;;  %p972_p4 = scmp.lt.u32.totalorder %s963_s30, %s1196_s7 }
  0x35   : > { %p966_p8 = pnand %p964_p11, %p935_p0 }
  0x36   : > { %p971_p3 = por %p970_p1, %p969_p13 }
  0x37   : > { %p967_p9 = pneg %p966_p8 }
  0x38   : > { %p973_p5 = por %p972_p4, %p971_p3 }
  0x3a   : > { %p974_p2 = pnand %p973_p5, %p967_p9 }
  0x3c   : > { %977 = shalt.err (!%p974_p2)
}
  0x3d   : > { %s978_s25 = scalar_lea.vmem %s1204_s14, 1536  ;;  %s1066_s26 = smov [#allocation5]  }
  0x3e   : > { %p979_p7 = scmp.ne.s32.totalorder %s1204_s14, %s978_s25  ;;  %s983_s27 = sshll.u32 %s1066_s26, 4  ;;  %s984_s27 = int_to_ptr.vmem [resolvable:$false] %s983_s27 }
  0x3f   : > { %s985_s29 = scalar_lea.vmem %s984_s27, 3072  ;;  %p986_p6 = scmp.lt.s32.totalorder %s1204_s14, %s984_s27 }
  0x40   : > { %p981_p11 = pnand %p979_p7, %p935_p0  ;;  %p987_p13 = scmp.lt.s32.totalorder %s985_s29, %s978_s25 }
  0x42   : > { %p982_p8 = pneg %p981_p11  ;;  %p988_p1 = por %p987_p13, %p986_p6 }
  0x44   : > { %p989_p3 = pnand %p988_p1, %p982_p8 }
  0x46   : > { %992 = shalt.err (!%p989_p3)
}
  0x47   : > { %s1067_s6 = smov 4096   ;;  %s1068_s8 = smov 512  }
  0x48   : > { %s1069_s30 = smov 32   ;;  %159 = sbr.rel (%p1200_p10) target bundleno = 222 (0xde), region = 28 }
  0x49   : > { %873 = dma.hbm_to_vmem [thread:$0]  (!%p1157_p12), %s1196_s7, 1536, %s1204_s14, %s137_s28, %s1067_s6, %s1068_s8, %s1069_s30  }
  0x4f   : > { %s1235_s5 = sand.u32 1, %s1055_s10   ;;  %p1736_p6 = scmp.ne.s32.totalorder %s1731_s20, 0 }
  0x50   : > { %s845_s17 = sshll.u32 %s1235_s5, 2  ;;  %s162_s19 = scalar_lea.sflag [#allocation3], %s1235_s5 }
  0x51   : > { %s165_s24 = scalar_lea.vmem [#allocation2], %s845_s17 }
  0x52   : > { %1038 = dma.done.wait (%p1736_p6), %s162_s19, 64  }
  0x53   : > { %1040 = vsyncadd (%p1736_p6), %s162_s19, 4294967232  ;;  %s860_s23 = smul.u32 96, %s1235_s5  ;;  %s171_s3 = scalar_lea.sflag [#allocation6], %s1235_s5 }
  0x55   : > { %s1247_s7 = scalar_lea.vmem [#allocation5], %s860_s23 }
  0x56   : > { %1042 = dma.done.wait (%p1736_p6), %s171_s3, 1536  }
  0x57   : > { %1044 = vsyncadd (%p1736_p6), %s171_s3, 4294965760  ;;  %v1710_v0 = vlaneseq  ;;  %v1268_v6 = vld [vmem:[%s165_s24] sm:$0xf]  ;;  %v1271_v7 = vld [vmem:[%s1247_s7] sm:$0xff]  ;;  %v1070_v15 = vmov 0   ;;  %s858_s20 = sshll.u32 %s1109_s13, 6 }
  0x58   : > { %v1274_v8 = vld [vmem:[%s1247_s7 + $0x8] sm:$0xff]  ;;  %v1277_v9 = vld [vmem:[%s1247_s7 + $0x10] sm:$0xff]  ;;  %v1280_v10 = vld [vmem:[%s1247_s7 + $0x18] sm:$0xff]  ;;  %s199_s14 = scalar_lea.vmem [#allocation7], %s845_s17  ;;  %s1662_s25 = scalar_lea.hbm %s1707_s2, %s858_s20 }
  0x59   : > { %v1254_v1 = vshrl.u32 %v1710_v0, 7  ;;  %v214_v0 = vld [vmem:[%s1247_s7 + $0x50] sm:$0xff]  ;;  %s743_s16 = sshll.u32 %s199_s14, 4  ;;  %s729_s13 = scalar_lea.sflag [#allocation4], %s1235_s5  ;;  %s1664_s16 = int_to_ptr.vmem [resolvable:$true] %s743_s16 }
  0x5a   : > { %s993_s26 = scalar_lea.vmem %s1664_s16, 64  ;;  %p1760_p0 = scmp.ne.s32.totalorder %s1732_s21, 0 }
  0x5b   : > { %v1257_v2 = vsub.s32 0, %v1254_v1  ;;  %v1260_v3 = vsub.s32 1, %v1254_v1  ;;  %v1263_v4 = vsub.s32 2, %v1254_v1  ;;  %v1266_v5 = vsub.s32 3, %v1254_v1  ;;  %p994_p12 = scmp.ne.s32.totalorder %s1664_s16, %s993_s26  ;;  %s1072_s27 = smov [#allocation7]  }
  0x5c   : > { %s997_s29 = sshll.u32 %s1072_s27, 4  ;;  %s998_s29 = int_to_ptr.vmem [resolvable:$false] %s997_s29 }
  0x5d   : > { %v1284_v11 = vrot.slane %v1268_v6, %v1257_v2  ;;  %v1288_v12 = vrot.slane %v1268_v6, %v1260_v3  ;;  %v1292_v13 = vrot.slane %v1268_v6, %v1263_v4  ;;  %v1296_v14 = vrot.slane %v1268_v6, %v1266_v5  ;;  %p995_p10 = pnand %p994_p12, %p1760_p0  ;;  %s999_s6 = scalar_lea.vmem %s998_s29, 128 }
  0x5e   : > { %p1000_p4 = scmp.lt.s32.totalorder %s1664_s16, %s998_s29  ;;  %p1001_p5 = scmp.lt.s32.totalorder %s999_s6, %s993_s26 }
  0x5f   : > { %1737 = vst [vmem:[#allocation11_spill] sm:$0xff] %v1296_v14  ;;  %vm237_vm0 = vcmp.gt.f32.partialorder %v1284_v11, %v1271_v7  ;;  %vm238_vm1 = vcmp.gt.f32.partialorder %v1288_v12, %v1274_v8  ;;  %vm239_vm2 = vcmp.gt.f32.partialorder %v1292_v13, %v1277_v9  ;;  %vm240_vm3 = vcmp.gt.f32.partialorder %v1296_v14, %v1280_v10  ;;  %p996_p9 = pneg %p995_p10 }
  0x60   : > { %v241_v16 = vsel %vm237_vm0, 1, %v1070_v15  ;;  %v242_v17 = vsel %vm238_vm1, 1, %v1070_v15  ;;  %v243_v18 = vsel %vm239_vm2, 1, %v1070_v15  ;;  %v244_v19 = vsel %vm240_vm3, 1, %v1070_v15  ;;  %p1002_p2 = por %p1001_p5, %p1000_p4 }
  0x61   : > { %v245_v20 = vrot.slane %v241_v16, 4  ;;  %v251_v21 = vrot.slane %v242_v17, 4  ;;  %v257_v22 = vrot.slane %v243_v18, 4  ;;  %v263_v23 = vrot.slane %v244_v19, 4 }
  0x62   : > { %p1003_p7 = pnand %p1002_p2, %p996_p9 }
  0x63   : > { %v246_v24 = vadd.s32 %v245_v20, %v241_v16  ;;  %v252_v25 = vadd.s32 %v251_v21, %v242_v17  ;;  %v258_v26 = vadd.s32 %v257_v22, %v243_v18  ;;  %v264_v27 = vadd.s32 %v263_v23, %v244_v19 }
  0x65   : > { %v247_v28 = vrot.slane %v246_v24, 2  ;;  %v253_v29 = vrot.slane %v252_v25, 2  ;;  %v259_v30 = vrot.slane %v258_v26, 2  ;;  %v265_v31 = vrot.slane %v264_v27, 2 }
  0x67   : > { %v248_v32 = vadd.s32 %v247_v28, %v246_v24  ;;  %v254_v33 = vadd.s32 %v253_v29, %v252_v25  ;;  %v260_v34 = vadd.s32 %v259_v30, %v258_v26  ;;  %v266_v35 = vadd.s32 %v265_v31, %v264_v27  ;;  %v209_v30 = vld [vmem:[%s1247_s7 + $0x28] sm:$0xff] }
  0x68   : > { %v1071_v26 = vmov 1966171168  }
  0x69   : > { %v249_v36 = vrot.slane %v248_v32, 1  ;;  %v255_v37 = vrot.slane %v254_v33, 1  ;;  %v261_v38 = vrot.slane %v260_v34, 1  ;;  %v267_v39 = vrot.slane %v266_v35, 1 }
  0x6a   : > { %v498_v27 = vunpack.c.l.s4 %v1071_v26 }
  0x6b   : > { %v1306_v40 = vadd.s32 %v249_v36, %v248_v32  ;;  %v1308_v41 = vadd.s32 %v255_v37, %v254_v33  ;;  %v1310_v42 = vadd.s32 %v261_v38, %v260_v34  ;;  %v1312_v43 = vadd.s32 %v267_v39, %v266_v35  ;;  %v210_v33 = vld [vmem:[%s1247_s7 + $0x30] sm:$0xff] }
  0x6c   : > { %v499_v38 = vunpack.c.0.s8 %v498_v27 }
  0x6d   : > { %1738 = vst [vmem:[#allocation12_spill] sm:$0xff] %v1306_v40  ;;  %1739 = vst [vmem:[#allocation13_spill] sm:$0xff] %v1308_v41  ;;  %v847_v44 = vadd.s32 4294967295, %v1306_v40  ;;  %vm273_vm4 = vcmp.eq.s32.totalorder %v1306_v40, 8  ;;  %v848_v45 = vadd.s32 4294967295, %v1308_v41  ;;  %v849_v46 = vadd.s32 4294967295, %v1310_v42 }
  0x6e   : > { %1740 = vst [vmem:[#allocation14_spill] sm:$0xff] %v1310_v42  ;;  %1741 = vst [vmem:[#allocation15_spill] sm:$0xff] %v1312_v43  ;;  %v850_v47 = vadd.s32 4294967295, %v1312_v43  ;;  %vm274_vm5 = vcmp.eq.s32.totalorder %v1308_v41, 8  ;;  %vm275_vm6 = vcmp.eq.s32.totalorder %v1310_v42, 8  ;;  %vm276_vm7 = vcmp.eq.s32.totalorder %v1312_v43, 8 }
  0x6f   : > { %vm269_vm8 = vcmp.eq.s32.totalorder %v1306_v40, 0  ;;  %vm270_vm9 = vcmp.eq.s32.totalorder %v1308_v41, 0  ;;  %vm271_vm10 = vcmp.eq.s32.totalorder %v1310_v42, 0  ;;  %v281_v48 = vsel %vm273_vm4, 6, %v847_v44 }
  0x70   : > { %vm272_vm11 = vcmp.eq.s32.totalorder %v1312_v43, 0  ;;  %v282_v49 = vsel %vm274_vm5, 6, %v848_v45  ;;  %v283_v50 = vsel %vm275_vm6, 6, %v849_v46  ;;  %v284_v51 = vsel %vm276_vm7, 6, %v850_v47 }
  0x71   : > { %v1336_v52 = vsel %vm269_vm8, 0, %v281_v48  ;;  %v1340_v53 = vsel %vm270_vm9, 0, %v282_v49  ;;  %v1344_v54 = vsel %vm271_vm10, 0, %v283_v50  ;;  %v1348_v55 = vsel %vm272_vm11, 0, %v284_v51 }
  0x72   : > { %v1351_v56 = vadd.s32 1, %v1336_v52  ;;  %v1354_v57 = vadd.s32 1, %v1340_v53  ;;  %v1357_v58 = vadd.s32 1, %v1344_v54  ;;  %v1360_v59 = vadd.s32 1, %v1348_v55 }
  0x73   : > { %vm295_vm12 = vcmp.eq.s32.totalorder %v1254_v1, %v1336_v52  ;;  %vm296_vm13 = vcmp.eq.s32.totalorder %v1254_v1, %v1340_v53  ;;  %vm297_vm14 = vcmp.eq.s32.totalorder %v1254_v1, %v1344_v54  ;;  %vm298_vm15 = vcmp.eq.s32.totalorder %v1254_v1, %v1348_v55 }
  0x74   : > { %vm299_vm0 = vcmp.eq.s32.totalorder %v1254_v1, %v1351_v56  ;;  %vm300_vm1 = vcmp.eq.s32.totalorder %v1254_v1, %v1354_v57  ;;  %vm301_vm2 = vcmp.eq.s32.totalorder %v1254_v1, %v1357_v58  ;;  %vm302_vm3 = vcmp.eq.s32.totalorder %v1254_v1, %v1360_v59 }
  0x75   : > { %v303_v60 = vsel %vm295_vm12, %v1271_v7, 0.0  ;;  %v304_v61 = vsel %vm296_vm13, %v1274_v8, 0.0  ;;  %v305_v62 = vsel %vm297_vm14, %v1277_v9, 0.0  ;;  %v306_v63 = vsel %vm298_vm15, %v1280_v10, 0.0 }
  0x76   : > { %v331_v15 = vsel %vm299_vm0, %v1271_v7, 0.0  ;;  %v307_v16 = vrot.slane %v303_v60, 4  ;;  %v332_v17 = vsel %vm300_vm1, %v1274_v8, 0.0  ;;  %v333_v18 = vsel %vm301_vm2, %v1277_v9, 0.0  ;;  %v208_v9 = vld [vmem:[%s1247_s7 + $0x20] sm:$0xff] }
  0x77   : > { %v334_v19 = vsel %vm302_vm3, %v1280_v10, 0.0  ;;  %v313_v20 = vrot.slane %v304_v61, 4  ;;  %v319_v7 = vrot.slane %v305_v62, 4  ;;  %v325_v21 = vrot.slane %v306_v63, 4  ;;  %v211_v10 = vld [vmem:[%s1247_s7 + $0x38] sm:$0xff] }
  0x78   : > { %v335_v22 = vrot.slane %v331_v15, 4  ;;  %v341_v23 = vrot.slane %v332_v17, 4  ;;  %v347_v24 = vrot.slane %v333_v18, 4  ;;  %v353_v8 = vrot.slane %v334_v19, 4 }
  0x79   : > { %v308_v25 = vadd.f32 %v307_v16, %v303_v60  ;;  %v314_v28 = vadd.f32 %v313_v20, %v304_v61  ;;  %v320_v29 = vadd.f32 %v319_v7, %v305_v62  ;;  %v326_v31 = vadd.f32 %v325_v21, %v306_v63 }
  0x7a   : > { %v336_v32 = vadd.f32 %v335_v22, %v331_v15  ;;  %v342_v34 = vadd.f32 %v341_v23, %v332_v17  ;;  %v348_v35 = vadd.f32 %v347_v24, %v333_v18  ;;  %v354_v36 = vadd.f32 %v353_v8, %v334_v19 }
  0x7b   : > { %v309_v37 = vrot.slane %v308_v25, 2  ;;  %v315_v39 = vrot.slane %v314_v28, 2  ;;  %v321_v44 = vrot.slane %v320_v29, 2  ;;  %v359_v45 = vsel %vm295_vm12, %v208_v9, 0.0 }
  0x7c   : > { %v360_v46 = vsel %vm296_vm13, %v209_v30, 0.0  ;;  %v327_v47 = vrot.slane %v326_v31, 2  ;;  %v337_v48 = vrot.slane %v336_v32, 2  ;;  %v361_v49 = vsel %vm297_vm14, %v210_v33, 0.0 }
  0x7d   : > { %v362_v50 = vsel %vm298_vm15, %v211_v10, 0.0  ;;  %v343_v51 = vrot.slane %v342_v34, 2  ;;  %v349_v60 = vrot.slane %v348_v35, 2  ;;  %v355_v61 = vrot.slane %v354_v36, 2 }
  0x7e   : > { %v363_v62 = vrot.slane %v359_v45, 4  ;;  %v369_v63 = vrot.slane %v360_v46, 4  ;;  %v1427_v15 = vsub.s32 %v499_v38, %v1254_v1  ;;  %v310_v16 = vadd.f32 %v309_v37, %v308_v25 }
  0x7f   : > { %v316_v17 = vadd.f32 %v315_v39, %v314_v28  ;;  %v375_v18 = vrot.slane %v361_v49, 4  ;;  %v381_v19 = vrot.slane %v362_v50, 4  ;;  %v322_v20 = vadd.f32 %v321_v44, %v320_v29 }
  0x80   : > { %1742 = vst [vmem:[#allocation16_spill] sm:$0xff] %v1427_v15  ;;  %v328_v7 = vadd.f32 %v327_v47, %v326_v31  ;;  %v338_v21 = vadd.f32 %v337_v48, %v336_v32  ;;  %v387_v22 = vsel %vm299_vm0, %v208_v9, 0.0  ;;  %v344_v23 = vadd.f32 %v343_v51, %v342_v34 }
  0x81   : > { %v350_v24 = vadd.f32 %v349_v60, %v348_v35  ;;  %v356_v8 = vadd.f32 %v355_v61, %v354_v36  ;;  %v388_v26 = vsel %vm300_vm1, %v209_v30, 0.0  ;;  %v364_v27 = vadd.f32 %v363_v62, %v359_v45  ;;  %v212_v60 = vld [vmem:[%s1247_s7 + $0x40] sm:$0xff] }
  0x82   : > { %v370_v38 = vadd.f32 %v369_v63, %v360_v46  ;;  %v389_v25 = vsel %vm301_vm2, %v210_v33, 0.0  ;;  %v390_v28 = vsel %vm302_vm3, %v211_v10, 0.0  ;;  %v311_v29 = vrot.slane %v310_v16, 1 }
  0x83   : > { %v376_v31 = vadd.f32 %v375_v18, %v361_v49  ;;  %v382_v9 = vadd.f32 %v381_v19, %v362_v50  ;;  %v391_v32 = vrot.slane %v387_v22, 4  ;;  %v317_v34 = vrot.slane %v316_v17, 1  ;;  %v213_v19 = vld [vmem:[%s1247_s7 + $0x48] sm:$0xff] }
  0x84   : > { %v323_v35 = vrot.slane %v322_v20, 1  ;;  %v329_v36 = vrot.slane %v328_v7, 1  ;;  %v397_v37 = vrot.slane %v388_v26, 4  ;;  %v339_v30 = vrot.slane %v338_v21, 1 }
  0x85   : > { %v345_v39 = vrot.slane %v344_v23, 1  ;;  %v403_v44 = vrot.slane %v389_v25, 4  ;;  %v409_v45 = vrot.slane %v390_v28, 4  ;;  %v351_v33 = vrot.slane %v350_v24, 1 }
  0x86   : > { %v357_v46 = vrot.slane %v356_v8, 1  ;;  %v365_v47 = vrot.slane %v364_v27, 2  ;;  %v371_v48 = vrot.slane %v370_v38, 2  ;;  %v1441_v10 = vadd.f32 %v311_v29, %v310_v16 }
  0x87   : > { %v377_v49 = vrot.slane %v376_v31, 2  ;;  %v383_v50 = vrot.slane %v382_v9, 2  ;;  %v392_v51 = vadd.f32 %v391_v32, %v387_v22  ;;  %v1444_v61 = vadd.f32 %v317_v34, %v316_v17 }
  0x88   : > { %v1446_v62 = vadd.f32 %v323_v35, %v322_v20  ;;  %v1448_v63 = vadd.f32 %v329_v36, %v328_v7  ;;  %v398_v18 = vadd.f32 %v397_v37, %v388_v26  ;;  %v1452_v43 = vadd.f32 %v339_v30, %v338_v21  ;;  %v215_v20 = vld [vmem:[%s1247_s7 + $0x58] sm:$0xff] }
  0x89   : > { %v1454_v42 = vadd.f32 %v345_v39, %v344_v23  ;;  %v404_v16 = vadd.f32 %v403_v44, %v389_v25  ;;  %v410_v29 = vadd.f32 %v409_v45, %v390_v28  ;;  %v1456_v41 = vadd.f32 %v351_v33, %v350_v24 }
  0x8a   : > { %v1458_v22 = vadd.f32 %v357_v46, %v356_v8  ;;  %v366_v32 = vadd.f32 %v365_v47, %v364_v27  ;;  %v1460_v17 = vadd.f32 %v371_v48, %v370_v38  ;;  %v1463_v34 = vadd.f32 %v377_v49, %v376_v31 }
  0x8b   : > { %v1465_v7 = vadd.f32 %v383_v50, %v382_v9  ;;  %v393_v26 = vrot.slane %v392_v51, 2  ;;  %v415_v21 = vsel %vm295_vm12, %v212_v60, 0.0  ;;  %v399_v23 = vrot.slane %v398_v18, 2 }
  0x8c   : > { %v416_v24 = vsel %vm296_vm13, %v213_v19, 0.0  ;;  %v417_v8 = vsel %vm297_vm14, %v214_v0, 0.0  ;;  %v443_v27 = vsel %vm299_vm0, %v212_v60, 0.0  ;;  %v405_v38 = vrot.slane %v404_v16, 2 }
  0x8d   : > { %v411_v25 = vrot.slane %v410_v29, 2  ;;  %v444_v52 = vsel %vm300_vm1, %v213_v19, 0.0  ;;  %v445_v28 = vsel %vm301_vm2, %v214_v0, 0.0  ;;  %v367_v53 = vrot.slane %v366_v32, 1 }
  0x8e   : > { %v373_v31 = vrot.slane %v1460_v17, 1  ;;  %v418_v54 = vsel %vm298_vm15, %v215_v20, 0.0  ;;  %v419_v9 = vrot.slane %v415_v21, 4  ;;  %v425_v56 = vrot.slane %v416_v24, 4 }
  0x8f   : > { %v431_v35 = vrot.slane %v417_v8, 4  ;;  %v446_v36 = vsel %vm302_vm3, %v215_v20, 0.0  ;;  %v447_v57 = vrot.slane %v443_v27, 4  ;;  %v453_v37 = vrot.slane %v444_v52, 4 }
  0x90   : > { %v459_v30 = vrot.slane %v445_v28, 4  ;;  %v471_v0 = vsub.f32 %v1452_v43, %v1441_v10  ;;  %v472_v58 = vsub.f32 %v1454_v42, %v1444_v61  ;;  %v379_v39 = vrot.slane %v1463_v34, 1 }
  0x91   : > { %v394_v55 = vadd.f32 %v393_v26, %v392_v51  ;;  %v400_v44 = vadd.f32 %v399_v23, %v398_v18  ;;  %v473_v45 = vsub.f32 %v1456_v41, %v1446_v62  ;;  %v420_v33 = vadd.f32 %v419_v9, %v415_v21 }
  0x92   : > { %v437_v46 = vrot.slane %v418_v54, 4  ;;  %v465_v1 = vrot.slane %v446_v36, 4  ;;  %v474_v59 = vsub.f32 %v1458_v22, %v1448_v63  ;;  %v426_v47 = vadd.f32 %v425_v56, %v416_v24 }
  0x93   : > { %v432_v48 = vadd.f32 %v431_v35, %v417_v8  ;;  %v448_v49 = vadd.f32 %v447_v57, %v443_v27  ;;  %917 = vrcp.f32 %v471_v0  ;;  %v406_v50 = vadd.f32 %v405_v38, %v404_v16 }
  0x94   : > { %v454_v60 = vadd.f32 %v453_v37, %v444_v52  ;;  %v460_v19 = vadd.f32 %v459_v30, %v445_v28  ;;  %919 = vrcp.f32 %v472_v58  ;;  %v412_v20 = vadd.f32 %v411_v25, %v410_v29 }
  0x95   : > { %921 = vrcp.f32 %v473_v45  ;;  %v495_v51 = vcombine.low %v1441_v10, %v1444_v61  ;;  %v496_v18 = vcombine.low %v1446_v62, %v1448_v63  ;;  %v421_v26 = vrot.slane %v420_v33, 2 }
  0x96   : > { %v438_v21 = vadd.f32 %v437_v46, %v418_v54  ;;  %v466_v23 = vadd.f32 %v465_v1, %v446_v36  ;;  %923 = vrcp.f32 %v474_v59  ;;  %v385_v24 = vrot.slane %v1465_v7, 1 }
  0x97   : > { %v427_v8 = vrot.slane %v426_v47, 2  ;;  %v433_v27 = vrot.slane %v432_v48, 2  ;;  %v449_v16 = vrot.slane %v448_v49, 2  ;;  %v395_v38 = vrot.slane %v394_v55, 1 }
  0x98   : > { %v401_v52 = vrot.slane %v400_v44, 1  ;;  %v455_v28 = vrot.slane %v454_v60, 2  ;;  %v461_v29 = vrot.slane %v460_v19, 2  ;;  %v1506_v25 = vadd.f32 %v367_v53, %v366_v32 }
  0x99   : > { %v407_v9 = vrot.slane %v406_v50, 1  ;;  %v503_v56 = vrot.slane %v495_v51, %v1427_v15  ;;  %v510_v35 = vrot.slane %v496_v18, %v1427_v15  ;;  %v413_v57 = vrot.slane %v412_v20, 1 }
  0x9a   : > { %v422_v54 = vadd.f32 %v421_v26, %v420_v33  ;;  %v439_v36 = vrot.slane %v438_v21, 2  ;;  %v467_v37 = vrot.slane %v466_v23, 2  ;;  %v1511_v30 = vadd.f32 %v373_v31, %v1460_v17 }
  0x9b   : > { %v428_v0 = vadd.f32 %v427_v8, %v426_v47  ;;  %v434_v58 = vadd.f32 %v433_v27, %v432_v48  ;;  %v450_v45 = vadd.f32 %v449_v16, %v448_v49  ;;  %v1513_v46 = vadd.f32 %v395_v38, %v394_v55 }
  0x9c   : > { %v1515_v1 = vadd.f32 %v401_v52, %v400_v44  ;;  %v456_v32 = vadd.f32 %v455_v28, %v454_v60  ;;  %v462_v53 = vadd.f32 %v461_v29, %v460_v19  ;;  %v1518_v51 = vadd.f32 %v379_v39, %v1463_v34 }
  0x9d   : > { %v918_v59 = vpop.eup %917  ;;  %v1521_v33 = vadd.f32 %v385_v24, %v1465_v7  ;;  %v1523_v18 = vadd.f32 %v407_v9, %v406_v50  ;;  %v511_v17 = vcombine.low %v503_v56, %v510_v35  ;;  %v1525_v47 = vadd.f32 %v413_v57, %v412_v20 }
  0x9e   : > { %1743 = vst [vmem:[#allocation17_spill] sm:$0xff] %v1518_v51  ;;  %v920_v31 = vpop.eup %919  ;;  %v423_v48 = vrot.slane %v422_v54, 1  ;;  %v440_v55 = vadd.f32 %v439_v36, %v438_v21  ;;  %v468_v49 = vadd.f32 %v467_v37, %v466_v23  ;;  %v429_v26 = vrot.slane %v428_v0, 1 }
  0x9f   : > { %1744 = vst [vmem:[#allocation18_spill] sm:$0xff] %v1521_v33  ;;  %1745 = vst [vmem:[#allocation19_spill] sm:$0xff] %v1523_v18  ;;  %v922_v44 = vpop.eup %921  ;;  %v435_v60 = vrot.slane %v434_v58, 1  ;;  %v451_v19 = vrot.slane %v450_v45, 1  ;;  %v525_v8 = vcombine.low %v918_v59, %v920_v31  ;;  %v457_v34 = vrot.slane %v456_v32, 1 }
  0xa0   : > { %1746 = vst [vmem:[#allocation20_spill] sm:$0xff] %v1525_v47  ;;  %v924_v27 = vpop.eup %923  ;;  %v463_v39 = vrot.slane %v462_v53, 1  ;;  %v1529_v7 = vsub.f32 %v1513_v46, %v1506_v25  ;;  %v1533_v50 = vsub.f32 %v1515_v1, %v1511_v30  ;;  %v1537_v20 = vsub.f32 %v1523_v18, %v1518_v51 }
  0xa1   : > { %v518_v21 = vrot.slane %v511_v17, %v1427_v15  ;;  %v526_v23 = vcombine.low %v922_v44, %v924_v27  ;;  %v533_v24 = vrot.slane %v525_v8, %v1427_v15  ;;  %v441_v16 = vrot.slane %v440_v55, 1 }
  0xa2   : > { %v469_v38 = vrot.slane %v468_v49, 1  ;;  %v1543_v52 = vsub.f32 %v1525_v47, %v1521_v33  ;;  %v1545_v28 = vadd.f32 %v423_v48, %v422_v54  ;;  %v1547_v29 = vadd.f32 %v429_v26, %v428_v0 }
  0xa3   : > { %v1549_v9 = vadd.f32 %v435_v60, %v434_v58  ;;  %v540_v56 = vrot.slane %v526_v23, %v1427_v15  ;;  %v1552_v35 = vadd.f32 %v451_v19, %v450_v45  ;;  %v1554_v57 = vadd.f32 %v457_v34, %v456_v32 }
  0xa4   : > { %1747 = vst [vmem:[#allocation21_spill] sm:$0xff] %v1543_v52  ;;  %v487_v36 = vmul.f32 %v918_v59, %v1529_v7  ;;  %v488_v37 = vmul.f32 %v920_v31, %v1533_v50  ;;  %v1558_v17 = vadd.f32 %v463_v39, %v462_v53  ;;  %v489_v8 = vmul.f32 %v922_v44, %v1537_v20 }
  0xa5   : > { %v520_v54 = vsub.f32 %v1268_v6, %v518_v21  ;;  %v541_v0 = vcombine.low %v533_v24, %v540_v56  ;;  %v1562_v48 = vadd.f32 %v441_v16, %v440_v55  ;;  %v1564_v58 = vadd.f32 %v469_v38, %v468_v49 }
  0xa6   : > { %v490_v45 = vmul.f32 %v924_v27, %v1543_v52  ;;  %v618_v59 = vadd.f32 %v1552_v35, %v1545_v28  ;;  %v619_v53 = vadd.f32 %v1554_v57, %v1547_v29  ;;  %v622_v31 = vmul.f32 2.0, %v487_v36 }
  0xa7   : > { %v548_v32 = vrot.slane %v541_v0, %v1427_v15  ;;  %v623_v26 = vmul.f32 2.0, %v488_v37  ;;  %v620_v6 = vadd.f32 %v1558_v17, %v1549_v9  ;;  %v624_v55 = vmul.f32 2.0, %v489_v8 }
  0xa8   : > { %v621_v49 = vadd.f32 %v1564_v58, %v1562_v48  ;;  %v625_v60 = vmul.f32 2.0, %v490_v45  ;;  %v626_v27 = vsub.f32 %v618_v59, %v622_v31 }
  0xa9   : > { %v550_v44 = vmul.f32 %v548_v32, %v520_v54  ;;  %v627_v34 = vsub.f32 %v619_v53, %v623_v26  ;;  %v628_v24 = vsub.f32 %v620_v6, %v624_v55 }
  0xaa   : > { %v629_v38 = vsub.f32 %v621_v49, %v625_v60 }
  0xab   : > { %v551_v19 = vsub.f32 1.0, %v550_v44  ;;  %v556_v39 = vrot.slane %v550_v44, %v1257_v2  ;;  %v560_v21 = vrot.slane %v550_v44, %v1260_v3  ;;  %v564_v23 = vrot.slane %v550_v44, %v1263_v4 }
  0xac   : > { %v568_v16 = vrot.slane %v550_v44, %v1266_v5 }
  0xad   : > { %v589_v56 = vrot.slane %v551_v19, %v1257_v2  ;;  %v593_v54 = vrot.slane %v551_v19, %v1260_v3  ;;  %v597_v0 = vrot.slane %v551_v19, %v1263_v4  ;;  %v601_v32 = vrot.slane %v551_v19, %v1266_v5 }
  0xae   : > { %v630_v59 = vmul.f32 %v626_v27, %v556_v39  ;;  %v631_v53 = vmul.f32 %v627_v34, %v560_v21  ;;  %v632_v31 = vmul.f32 %v628_v24, %v564_v23  ;;  %v573_v26 = vmul.f32 %v556_v39, %v487_v36 }
  0xaf   : > { %v574_v15 = vmul.f32 %v560_v21, %v488_v37  ;;  %v581_v40 = vmul.f32 %v556_v39, %v1545_v28  ;;  %v633_v33 = vmul.f32 %v629_v38, %v568_v16  ;;  %v582_v6 = vmul.f32 %v560_v21, %v1547_v29 }
  0xb0   : > { %v634_v44 = vmul.f32 %v630_v59, %v589_v56  ;;  %v635_v55 = vmul.f32 %v631_v53, %v593_v54  ;;  %v636_v49 = vmul.f32 %v632_v31, %v597_v0  ;;  %v575_v2 = vmul.f32 %v564_v23, %v489_v8 }
  0xb1   : > { %v576_v60 = vmul.f32 %v568_v16, %v490_v45  ;;  %v583_v3 = vmul.f32 %v564_v23, %v1549_v9  ;;  %v637_v4 = vmul.f32 %v633_v33, %v601_v32  ;;  %v584_v5 = vmul.f32 %v568_v16, %v1562_v48 }
  0xb2   : > { %v638_v19 = vadd.f32 %v634_v44, %v487_v36  ;;  %v639_v27 = vadd.f32 %v635_v55, %v488_v37  ;;  %v640_v34 = vadd.f32 %v636_v49, %v489_v8  ;;  %v577_v24 = vmul.f32 %v573_v26, %v556_v39 }
  0xb3   : > { %v606_v47 = vmul.f32 %v589_v56, %v581_v40  ;;  %v641_v14 = vadd.f32 %v637_v4, %v490_v45  ;;  %v578_v51 = vmul.f32 %v574_v15, %v560_v21  ;;  %v607_v38 = vmul.f32 %v593_v54, %v582_v6 }
  0xb4   : > { %925 = vrcp.f32 %v638_v19  ;;  %v579_v52 = vmul.f32 %v575_v2, %v564_v23  ;;  %v608_v59 = vmul.f32 %v597_v0, %v583_v3  ;;  %v580_v53 = vmul.f32 %v576_v60, %v568_v16  ;;  %v1751_v16 = vld [vmem:[#allocation11_spill] sm:$0xff]  ;;  %v1753_v0 = vld [vmem:[#allocation18_spill] sm:$0xff] }
  0xb5   : > { %927 = vrcp.f32 %v639_v27  ;;  %v609_v31 = vmul.f32 %v601_v32, %v584_v5  ;;  %v610_v18 = vadd.f32 %v606_v47, %v577_v24  ;;  %v674_v33 = vmul.f32 %v1552_v35, %v1452_v43 }
  0xb6   : > { %929 = vrcp.f32 %v640_v34  ;;  %v611_v36 = vadd.f32 %v607_v38, %v578_v51  ;;  %v654_v37 = vmul.f32 %v1545_v28, %v1284_v11  ;;  %v658_v40 = vmul.f32 %v1545_v28, %v1441_v10 }
  0xb7   : > { %931 = vrcp.f32 %v641_v14  ;;  %v675_v15 = vmul.f32 %v1554_v57, %v1454_v42  ;;  %v612_v8 = vadd.f32 %v608_v59, %v579_v52  ;;  %v655_v45 = vmul.f32 %v1547_v29, %v1288_v12 }
  0xb8   : > { %v659_v14 = vmul.f32 %v1547_v29, %v1444_v61  ;;  %v676_v43 = vmul.f32 %v1558_v17, %v1456_v41  ;;  %v613_v51 = vadd.f32 %v609_v31, %v580_v53  ;;  %v656_v47 = vmul.f32 %v1549_v9, %v1292_v13 }
  0xb9   : > { %v660_v10 = vmul.f32 %v1549_v9, %v1446_v62  ;;  %v677_v42 = vmul.f32 %v1564_v58, %v1458_v22  ;;  %v614_v52 = vmul.f32 %v610_v18, %v1529_v7  ;;  %v661_v28 = vmul.f32 %v1562_v48, %v1448_v63  ;;  %v1748_v7 = vld [vmem:[#allocation19_spill] sm:$0xff] }
  0xba   : > { %v670_v61 = vmul.f32 %v1552_v35, %v1284_v11  ;;  %v678_v41 = vsub.f32 %v1513_v46, %v674_v33  ;;  %v615_v29 = vmul.f32 %v611_v36, %v1533_v50  ;;  %v662_v39 = vsub.f32 %v1506_v25, %v658_v40  ;;  %v1749_v46 = vld [vmem:[#allocation21_spill] sm:$0xff] }
  0xbb   : > { %v671_v62 = vmul.f32 %v1554_v57, %v1288_v12  ;;  %v679_v9 = vsub.f32 %v1515_v1, %v675_v15  ;;  %v616_v22 = vmul.f32 %v612_v8, %v1537_v20  ;;  %v663_v18 = vsub.f32 %v1511_v30, %v659_v14  ;;  %v1750_v50 = vld [vmem:[#allocation17_spill] sm:$0xff]  ;;  %v1752_v12 = vld [vmem:[#allocation20_spill] sm:$0xff] }
  0xbc   : > { %v672_v63 = vmul.f32 %v1558_v17, %v1292_v13  ;;  %v680_v11 = vsub.f32 %v1748_v7, %v676_v43  ;;  %v617_v21 = vmul.f32 %v613_v51, %v1749_v46  ;;  %v664_v23 = vsub.f32 %v1750_v50, %v660_v10  ;;  %v1758_v14 = vld [vmem:[#allocation16_spill] sm:$0xff] }
  0xbd   : > { %v673_v56 = vmul.f32 %v1564_v58, %v1751_v16  ;;  %v681_v57 = vsub.f32 %v1752_v12, %v677_v42  ;;  %v657_v20 = vmul.f32 %v1562_v48, %v1751_v16  ;;  %v665_v32 = vsub.f32 %v1753_v0, %v661_v28 }
  0xbe   : > { %v926_v35 = vpop.eup %925  ;;  %v682_v13 = vadd.f32 %v678_v41, %v670_v61  ;;  %v666_v6 = vadd.f32 %v662_v39, %v654_v37  ;;  %v683_v44 = vadd.f32 %v679_v9, %v671_v62  ;;  %v667_v60 = vadd.f32 %v663_v18, %v655_v45 }
  0xbf   : > { %v928_v1 = vpop.eup %927  ;;  %v643_v54 = vmul.f32 %v926_v35, %v614_v52  ;;  %v684_v58 = vadd.f32 %v680_v11, %v672_v63  ;;  %v668_v5 = vadd.f32 %v664_v23, %v656_v47  ;;  %v685_v19 = vadd.f32 %v681_v57, %v673_v56 }
  0xc0   : > { %v930_v17 = vpop.eup %929  ;;  %v645_v26 = vmul.f32 %v928_v1, %v615_v29  ;;  %v669_v27 = vadd.f32 %v665_v32, %v657_v20  ;;  %v1759_v10 = vlaneseq }
  0xc1   : > { %v932_v55 = vpop.eup %931  ;;  %v647_v49 = vmul.f32 %v930_v17, %v616_v22  ;;  %v650_v2 = vadd.f32 %v643_v54, %v1506_v25 }
  0xc2   : > { %v649_v3 = vmul.f32 %v932_v55, %v617_v21  ;;  %v651_v4 = vadd.f32 %v645_v26, %v1511_v30 }
  0xc3   : > { %v652_v48 = vadd.f32 %v647_v49, %v1750_v50  ;;  %v686_v24 = vsel %vm273_vm4, %v682_v13, %v650_v2  ;;  %vm725_vm4 = vcmp.lt.s32.totalorder %v1759_v10, 512 }
  0xc4   : > { %v653_v38 = vadd.f32 %v649_v3, %v1753_v0  ;;  %v687_v25 = vsel %vm274_vm5, %v683_v44, %v651_v4  ;;  %v690_v53 = vsel %vm269_vm8, %v666_v6, %v686_v24 }
  0xc5   : > { %v688_v30 = vsel %vm275_vm6, %v684_v58, %v652_v48  ;;  %v691_v33 = vsel %vm270_vm9, %v667_v60, %v687_v25 }
  0xc6   : > { %v689_v37 = vsel %vm276_vm7, %v685_v19, %v653_v38  ;;  %v692_v40 = vsel %vm271_vm10, %v668_v5, %v688_v30  ;;  %v698_v15 = vcombine.low %v690_v53, %v691_v33 }
  0xc7   : > { %v693_v8 = vsel %vm272_vm11, %v669_v27, %v689_v37 }
  0xc8   : > { %v699_v45 = vcombine.low %v692_v40, %v693_v8  ;;  %v706_v43 = vrot.slane %v698_v15, %v1758_v14 }
  0xca   : > { %v713_v51 = vrot.slane %v699_v45, %v1758_v14 }
  0xcc   : > { %v714_v47 = vcombine.low %v706_v43, %v713_v51 }
  0xce   : > { %v721_v42 = vrot.slane %v714_v47, %v1758_v14 }
  0xd0   : > { %727 = vst.msk [vmem:[%s199_s14] sm:$0xf] %vm725_vm4, %v721_v42 }
  0xd1   : > { %1006 = shalt.err (!%p1003_p7)
}
  0xd2   : > { %s1007_s8 = scalar_lea.hbm %s1662_s25, 64  ;;  %s1011_s17 = scalar_lea.hbm %s1707_s2, 512 }
  0xd3   : > { %p1008_p11 = scmp.ne.s32.totalorder %s1662_s25, %s1007_s8  ;;  %p1012_p1 = scmp.lt.u32.totalorder %s1662_s25, %s1707_s2 }
  0xd4   : > { %p1013_p3 = scmp.lt.u32.totalorder %s1011_s17, %s1007_s8  ;;  %p1015_p12 = scmp.lt.u32.totalorder %s1007_s8, %s1662_s25 }
  0xd5   : > { %p1009_p8 = pnand %p1008_p11, %p1760_p0 }
  0xd6   : > { %p1014_p6 = por %p1013_p3, %p1012_p1 }
  0xd7   : > { %p1010_p13 = pneg %p1009_p8 }
  0xd8   : > { %p1016_p10 = por %p1015_p12, %p1014_p6 }
  0xda   : > { %p1017_p9 = pnand %p1016_p10, %p1010_p13 }
  0xdc   : > { %1020 = shalt.err (!%p1017_p9)
}
  0xdd   : > { %865 = dma.vmem_to_hbm [thread:$0]  (%p1760_p0), %s1664_s16, 64, %s1662_s25, %s729_s13  }
  0xde PF: > { %p879_p4 = scmp.ge.s32.totalorder %s1063_s12, 2  ;;  %s755_s23 = sand.u32 1, %s1051_s9  }
  0xdf   : > { %p1761_p5 = scmp.ne.s32.totalorder %s1733_s22, 0  ;;  %s756_s3 = scalar_lea.sflag [#allocation4], %s755_s23 }
  0xe1   : > { %p875_p2 = pnand %p879_p4, %p1761_p5 }
  0xe3   : > { %1046 = dma.done.wait (!%p875_p2), %s756_s3, 64  }
  0xe4   : > { %1048 = vsyncadd (!%p875_p2), %s756_s3, 4294967232  ;;  %p18_p7 = scmp.ge.s32.totalorder %s1113_s15, 10   ;;  %s1762_s9 = smov %s1055_s10 }
  0xe5   : > { %s1763_s10 = smov %s1059_s11  ;;  %s1764_s11 = smov %s1125_s18 }
  0xe6   : > { %s1765_s12 = smov %s1113_s15  ;;  %20 = sbr.rel (!%p18_p7) target bundleno = 7 (0x7), region = 86 }
  0xed   :  { %761 = vsyncpa [#allocation3], 1 }
  0xee   :  { %763 = vsyncpa [#allocation3 + $0x1], 1 }
  0xef   :  { %764 = vsyncpa [#allocation6], 1 }
  0xf0   :  { %766 = vsyncpa [#allocation6 + $0x1], 1 }
  0xf1   :  { %767 = vsyncpa [#allocation4], 1 }
  0xf2   :  { %769 = vsyncpa [#allocation4 + $0x1], 1 }

</bundles_post_ra>
